<compile_context>
chip_gen: v6e
topology: v6e:2x2x1
jax: 0.10.0
libtpu: 0.0.40
codegen_flags: <defaults>
</compile_context>

<pallas_src>
import functools

import jax
import jax.numpy as jnp
from jax.experimental import pallas as pl
from jax.experimental.pallas import tpu as pltpu


GAMMA = 2                 # FocalLoss(gamma=2); Python int -> (1-pt)**2 is one vmul
_LANE = 128
_SUBLANE = 8
# Per-step budget for the live f32 working set of one logits tile (~3x f32
# tile bytes of temporaries) plus the lane-padded targets block.  Input
# double-buffering and slack are covered by the explicit vmem_limit below.
_TILE_BYTES_BUDGET = 2 * 1024 * 1024
_MAX_TILE_ROWS = 1024     # 512-1024 rows already ~85%+ of HBM roofline
_VMEM_LIMIT_BYTES = 32 * 1024 * 1024


def _num_tensorcores():
    """TensorCores per chip: 2 on megacore parts (v4 / v7x), 1 on v5e / v6e."""
    # TODO(synk): if a v7x bundle dump shows one core doing all inner steps,
    # switch the outer axis to pltpu.CORE_PARALLEL (or pl.core_map).
    try:
        kind = jax.devices()[0].device_kind.lower()
    except Exception:
        return 1
    return 2 if ("v7" in kind or "v4" in kind) else 1


def _choose_tile_rows(n, c, itemsize):
    """Row-tile size: multiple of the dtype's sublane packing, VMEM bounded."""
    # bf16 packs (16, 128) per vreg, 8-bit packs (32, 128): keep the
    # second-to-last block dim a multiple of the packing factor.
    row_mult = max(_SUBLANE, 32 // max(int(itemsize), 1))
    if n <= row_mult:
        return n                                    # block equals full array dim
    c_lanes = max(pl.cdiv(c, _LANE) * _LANE, _LANE)  # lane-padded footprint
    # ~3 (TN, C) f32 temporaries + the lane-padded (TN, 128) int32 targets block.
    bytes_per_row = 3 * c_lanes * 4 + _LANE * 4
    tn = _TILE_BYTES_BUDGET // bytes_per_row
    tn = (tn // row_mult) * row_mult
    tn = min(tn, _MAX_TILE_ROWS, (n // row_mult) * row_mult)
    return max(row_mult, tn)


def _focal_loss_kernel(logits_ref, tgt_ref, out_ref, *, n_rows, tile_rows, n_inner):
    """Accumulates sum_i (1 - pt_i)**gamma * ce_i into a per-core SMEM scalar."""
    p = pl.program_id(0)   # "parallel" core-split axis
    i = pl.program_id(1)   # "arbitrary" reduction axis over row tiles

    @pl.when(i == 0)
    def _init():
        out_ref[0, 0] = jnp.float32(0.0)

    logits = logits_ref[...]                               # (TN, C), native dtype
    tgt = tgt_ref[...]                                     # (TN, 1) int32

    # Global (unclamped) row ids of this tile: masks the partial last tile and
    # the clamped duplicate blocks coming from the core split.
    row0 = (p * n_inner + i) * tile_rows
    rows = row0 + jax.lax.broadcasted_iota(jnp.int32, (tile_rows, 1), 0)
    row_mask = rows < n_rows                               # (TN, 1)

    # Zero padded rows *before* the transcendentals so undefined data in the
    # partial last tile can never generate inf/NaN mid-pipeline.
    logits = jnp.where(row_mask, logits, jnp.zeros((), logits.dtype))

    # Numerically stable softmax pieces.  max and the one-hot select are exact
    # in the native dtype; only the exp operand is upcast to f32.
    m = jnp.max(logits, axis=-1, keepdims=True)                        # (TN, 1)
    col = jax.lax.broadcasted_iota(jnp.int32, logits.shape, 1)         # (TN, C)
    onehot = col == tgt                                                # (TN, C)
    # Target-class logit via one-hot select + lane reduce (exact: one nonzero
    # per row).  Deliberately *not* routed through the MXU.
    tgt_logit = jnp.sum(jnp.where(onehot, logits, jnp.zeros((), logits.dtype)),
                        axis=-1, keepdims=True).astype(jnp.float32)    # (TN, 1)

    e = jnp.exp((logits - m).astype(jnp.float32))                      # (TN, C) f32
    s = jnp.sum(e, axis=-1, keepdims=True)                             # (TN, 1)

    m32 = m.astype(jnp.float32)
    ce = (m32 - tgt_logit) + jnp.log(s)                                # cross-entropy
    # pt = exp(-ce): reuse e for the numerator instead of a separate exp.
    # approx reciprocal (EUP) is safe here: GAMMA is even, so a pt marginally
    # above 1 cannot flip the sign of (1 - pt) ** GAMMA.
    pt_num = jnp.sum(jnp.where(onehot, e, 0.0), axis=-1, keepdims=True)
    pt = pt_num * pl.reciprocal(s, approx=True)
    focal = (1.0 - pt) ** GAMMA * ce                                   # (TN, 1)

    focal = jnp.where(row_mask, focal, 0.0)
    out_ref[0, 0] += jnp.sum(focal)


def focal_loss(inputs, targets):
    """inputs: (N, C) float32/bfloat16 logits; targets: (N,) integer class ids."""
    # TODO(synk): for production C < 128, pack 128 // C rows per lane row in the
    # wrapper (adjusting the one-hot iota) to recover lane utilization.
    n, c = inputs.shape
    tgt2d = targets.astype(jnp.int32).reshape(n, 1)

    num_cores = _num_tensorcores()
    tile_rows = _choose_tile_rows(n, c, inputs.dtype.itemsize)
    n_blocks = pl.cdiv(n, tile_rows)
    n_inner = pl.cdiv(n_blocks, num_cores)

    def row_index_map(p, i):
        # Clamp so the DMA never addresses past the last block; duplicated /
        # padded rows are zero-masked inside the kernel.
        return (jnp.minimum(p * n_inner + i, n_blocks - 1), 0)

    kernel = functools.partial(_focal_loss_kernel,
                               n_rows=n, tile_rows=tile_rows, n_inner=n_inner)

    partials = pl.pallas_call(
        kernel,
        out_shape=jax.ShapeDtypeStruct((num_cores, 1), jnp.float32),
        grid_spec=pltpu.PrefetchScalarGridSpec(
            num_scalar_prefetch=0,
            grid=(num_cores, n_inner),
            in_specs=[
                # TODO(synk): sweep pipeline_mode=pl.Buffered(3) on the logits
                # spec on v5e hardware (HBM-bound with these smaller tiles).
                pl.BlockSpec((tile_rows, c), row_index_map),   # logits tile
                pl.BlockSpec((tile_rows, 1), row_index_map),   # target ids tile
            ],
            out_specs=pl.BlockSpec((1, 1), lambda p, i: (p, 0),
                                   memory_space=pltpu.SMEM),
        ),
        compiler_params=pltpu.CompilerParams(
            dimension_semantics=("parallel", "arbitrary"),
            vmem_limit_bytes=_VMEM_LIMIT_BYTES),
    )(inputs, tgt2d)

    return jnp.sum(partials) / jnp.float32(n)   # mean over batch


def _ref_loss(x, t):
    """Pure-JAX reference (same math as the PyTorch module)."""
    logp = jax.nn.log_softmax(x.astype(jnp.float32), axis=-1)
    ce = -jnp.take_along_axis(logp, t[:, None], axis=-1)[:, 0]
    return jnp.mean((1.0 - jnp.exp(-ce)) ** GAMMA * ce)


if __name__ == "__main__":
    key = jax.random.PRNGKey(0)
    k1, k2 = jax.random.split(key)

    N, C = 16, 32                                            # small synthetic shapes
    inputs = jax.random.normal(k1, (N, C), dtype=jnp.float32)
    targets = jax.random.randint(k2, (N,), 0, C, dtype=jnp.int32)

    loss = jax.jit(focal_loss)(inputs, targets)
    jax.block_until_ready(loss)
    ref = _ref_loss(inputs, targets)
    assert jnp.allclose(loss, ref, rtol=2e-3, atol=1e-3), (loss, ref)

    # bf16 ingestion path (halves HBM traffic; softmax still reduced in f32;
    # slightly looser tolerance since the exp operand is formed in bf16).
    loss_bf16 = jax.jit(focal_loss)(inputs.astype(jnp.bfloat16), targets)
    jax.block_until_ready(loss_bf16)
    ref_bf16 = _ref_loss(inputs.astype(jnp.bfloat16), targets)
    assert jnp.allclose(loss_bf16, ref_bf16, rtol=2e-2, atol=2e-3), (loss_bf16, ref_bf16)

    print("KERNEL_OK")
</pallas_src>

<mosaic_0001>
module attributes {stable_mosaic.version = 11 : i64} {
  func.func @_focal_loss_kernel(%arg0: i32, %arg1: i32, %arg2: memref<16x32xf32, #tpu.memory_space<vmem>>, %arg3: memref<16x1xi32, #tpu.memory_space<vmem>>, %arg4: memref<1x1xf32, #tpu.memory_space<smem>>) attributes {dimension_semantics = [#tpu.dimension_semantics<parallel>, #tpu.dimension_semantics<arbitrary>], iteration_bounds = array<i64: 1, 1>, scalar_prefetch = 0 : i64, scratch_operands = 0 : i64, tpu.core_type = #tpu.core_type<tc>, window_params = [{transform_indices = @transform_0, window_bounds = array<i64: 16, 32>}, {transform_indices = @transform_1, window_bounds = array<i64: 16, 1>}, {transform_indices = @transform_2, window_bounds = array<i64: 1, 1>}]} {
    %c0_i32 = arith.constant 0 : i32
    %0 = arith.cmpi eq, %arg1, %c0_i32 : i32
    %1 = arith.extui %0 : i1 to i32
    %c0_i32_0 = arith.constant 0 : i32
    %2 = arith.cmpi ne, %1, %c0_i32_0 : i32
    scf.if %2 {
      %cst_18 = arith.constant 0.000000e+00 : f32
      %c0_19 = arith.constant 0 : index
      %c0_20 = arith.constant 0 : index
      %53 = memref.load %arg4[%c0_19, %c0_20] : memref<1x1xf32, #tpu.memory_space<smem>>
      memref.store %cst_18, %arg4[%c0_19, %c0_20] : memref<1x1xf32, #tpu.memory_space<smem>>
    } else {
    }
    %c0 = arith.constant 0 : index
    %c0_1 = arith.constant 0 : index
    %3 = vector.load %arg2[%c0, %c0_1] : memref<16x32xf32, #tpu.memory_space<vmem>>, vector<16x32xf32>
    %c0_2 = arith.constant 0 : index
    %c0_3 = arith.constant 0 : index
    %4 = vector.load %arg3[%c0_2, %c0_3] : memref<16x1xi32, #tpu.memory_space<vmem>>, vector<16x1xi32>
    %c1_i32 = arith.constant 1 : i32
    %5 = arith.muli %arg0, %c1_i32 : i32
    %6 = arith.addi %5, %arg1 : i32
    %c16_i32 = arith.constant 16 : i32
    %7 = arith.muli %6, %c16_i32 : i32
    %8 = tpu.iota {dimensions = array<i32: 0>} : vector<16x1xi32>
    %9 = vector.broadcast %7 : i32 to vector<16x1xi32>
    %10 = arith.addi %9, %8 : vector<16x1xi32>
    %c16_i32_4 = arith.constant 16 : i32
    %11 = vector.broadcast %c16_i32_4 : i32 to vector<16x1xi32>
    %12 = arith.cmpi slt, %10, %11 : vector<16x1xi32>
    %cst = arith.constant 0.000000e+00 : f32
    %13 = vector.shape_cast %12 : vector<16x1xi1> to vector<16x1xi1>
    %14 = vector.broadcast %13 : vector<16x1xi1> to vector<16x32xi1>
    %15 = vector.broadcast %cst : f32 to vector<16x32xf32>
    %16 = arith.select %14, %3, %15 : vector<16x32xi1>, vector<16x32xf32>
    %cst_5 = arith.constant dense<0xFF800000> : vector<16xf32>
    %17 = vector.multi_reduction <maximumf>, %16, %cst_5 [1] : vector<16x32xf32> to vector<16xf32>
    %18 = vector.shape_cast %17 : vector<16xf32> to vector<16x1xf32>
    %19 = tpu.iota {dimensions = array<i32: 1>} : vector<16x32xi32>
    %20 = vector.broadcast %4 : vector<16x1xi32> to vector<16x32xi32>
    %21 = arith.cmpi eq, %19, %20 : vector<16x32xi32>
    %cst_6 = arith.constant 0.000000e+00 : f32
    %22 = vector.broadcast %cst_6 : f32 to vector<16x32xf32>
    %23 = arith.select %21, %16, %22 : vector<16x32xi1>, vector<16x32xf32>
    %cst_7 = arith.constant dense<0.000000e+00> : vector<16xf32>
    %24 = vector.multi_reduction <add>, %23, %cst_7 [1] : vector<16x32xf32> to vector<16xf32>
    %25 = vector.shape_cast %24 : vector<16xf32> to vector<16x1xf32>
    %26 = vector.broadcast %18 : vector<16x1xf32> to vector<16x32xf32>
    %27 = arith.subf %16, %26 : vector<16x32xf32>
    %28 = math.exp %27 : vector<16x32xf32>
    %cst_8 = arith.constant dense<0.000000e+00> : vector<16xf32>
    %29 = vector.multi_reduction <add>, %28, %cst_8 [1] : vector<16x32xf32> to vector<16xf32>
    %30 = vector.shape_cast %29 : vector<16xf32> to vector<16x1xf32>
    %31 = arith.subf %18, %25 : vector<16x1xf32>
    %32 = math.log %30 : vector<16x1xf32>
    %33 = arith.addf %31, %32 : vector<16x1xf32>
    %cst_9 = arith.constant 0.000000e+00 : f32
    %34 = vector.broadcast %cst_9 : f32 to vector<16x32xf32>
    %35 = arith.select %21, %28, %34 : vector<16x32xi1>, vector<16x32xf32>
    %cst_10 = arith.constant dense<0.000000e+00> : vector<16xf32>
    %36 = vector.multi_reduction <add>, %35, %cst_10 [1] : vector<16x32xf32> to vector<16xf32>
    %37 = vector.shape_cast %36 : vector<16xf32> to vector<16x1xf32>
    %38 = tpu.reciprocal %30 {approx = true} : vector<16x1xf32> -> vector<16x1xf32>
    %39 = arith.mulf %37, %38 : vector<16x1xf32>
    %cst_11 = arith.constant 1.000000e+00 : f32
    %40 = vector.broadcast %cst_11 : f32 to vector<16x1xf32>
    %41 = arith.subf %40, %39 : vector<16x1xf32>
    %42 = arith.mulf %41, %41 : vector<16x1xf32>
    %43 = arith.mulf %42, %33 : vector<16x1xf32>
    %cst_12 = arith.constant 0.000000e+00 : f32
    %44 = vector.broadcast %cst_12 : f32 to vector<16x1xf32>
    %45 = arith.select %12, %43, %44 : vector<16x1xi1>, vector<16x1xf32>
    %c0_13 = arith.constant 0 : index
    %c0_14 = arith.constant 0 : index
    %46 = memref.load %arg4[%c0_13, %c0_14] : memref<1x1xf32, #tpu.memory_space<smem>>
    %47 = vector.shape_cast %45 : vector<16x1xf32> to vector<1x16x1xf32>
    %cst_15 = arith.constant dense<0.000000e+00> : vector<1xf32>
    %48 = vector.multi_reduction <add>, %47, %cst_15 [1, 2] : vector<1x16x1xf32> to vector<1xf32>
    %49 = vector.shape_cast %48 : vector<1xf32> to vector<1x1x1xf32>
    %50 = vector.extract %49[0, 0, 0] : f32 from vector<1x1x1xf32>
    %51 = arith.addf %46, %50 : f32
    %c0_16 = arith.constant 0 : index
    %c0_17 = arith.constant 0 : index
    %52 = memref.load %arg4[%c0_16, %c0_17] : memref<1x1xf32, #tpu.memory_space<smem>>
    memref.store %51, %arg4[%c0_16, %c0_17] : memref<1x1xf32, #tpu.memory_space<smem>>
    return
  }
  func.func @transform_0(%arg0: i32, %arg1: i32) -> (i32, i32) {
    %c1_i32 = arith.constant 1 : i32
    %0 = arith.muli %arg0, %c1_i32 : i32
    %1 = arith.addi %0, %arg1 : i32
    %c0_i32 = arith.constant 0 : i32
    %2 = arith.minsi %1, %c0_i32 : i32
    %c0_i32_0 = arith.constant 0 : i32
    %c0_i32_1 = arith.constant 0 : i32
    return %2, %c0_i32_0 : i32, i32
  }
  func.func @transform_1(%arg0: i32, %arg1: i32) -> (i32, i32) {
    %c1_i32 = arith.constant 1 : i32
    %0 = arith.muli %arg0, %c1_i32 : i32
    %1 = arith.addi %0, %arg1 : i32
    %c0_i32 = arith.constant 0 : i32
    %2 = arith.minsi %1, %c0_i32 : i32
    %c0_i32_0 = arith.constant 0 : i32
    %c0_i32_1 = arith.constant 0 : i32
    return %2, %c0_i32_0 : i32, i32
  }
  func.func @transform_2(%arg0: i32, %arg1: i32) -> (i32, i32) {
    %c0_i32 = arith.constant 0 : i32
    %c0_i32_0 = arith.constant 0 : i32
    return %arg0, %c0_i32 : i32, i32
  }
}

</mosaic_0001>

<bundles_post_ra>
// kernel: focal_loss.1
= control target key start
LH: loop header
LB: loop body
LE: loop exit
PB: predicated region body
PF: predicated region fallthrough
CT: control target
= control target key end

     0   :  { %vm102_vm0 = vcmask 261120   ;;  %v238_v4 = vmov 0   ;;  %s278_s0 = inlined_call_operand.vmem [shape: f32[16,32], index: 0, kind: input, shape index: {}]   ;;  %s279_s1 = inlined_call_operand.vmem [shape: s32[16,1], index: 1, kind: input, shape index: {}]   ;;  %s280_s2 = inlined_call_operand.hbm [shape: f32[1,1], index: 2, kind: output, shape index: {}]  }
   0x1   :  { %v82_v0 = vld [vmem:[%s278_s0] sm:$0xff]  ;;  %v83_v1 = vld [vmem:[%s278_s0 + $0x8] sm:$0xff]  ;;  %214 = vset.pattern.permute.xlu1 %v238_v4  ;;  %215 = vset.pattern.permute.xlu0 %v238_v4 }
   0x2   :  { %v84_v2 = vld [vmem:[%s279_s1] sm:$0xff]  ;;  %v103_v3 = vsel %vm102_vm0, %v82_v0, -inf }
   0x3   :  { %7 = vsyncpa [#allocation3], 0  ;;  %104 = vmax.xlane.f32.xlu0 %v103_v3  ;;  %112 = vperm.xlu1 %214, %v84_v2   ;;  %v106_v5 = vsel %vm102_vm0, %v83_v1, -inf  ;;  %v85_v6 = vld [vmem:[%s279_s1 + $0x8] sm:$0xff]  ;;  %v109_v13 = vlaneseq  ;;  %vm168_vm3 = vcmask 7168   ;;  %s239_s1 = smov [#allocation2]  }
   0x5   :  { %v110_v14 = vand.u32 127, %v109_v13 }
   0x7   :  { %107 = vmax.xlane.f32.xlu0 %v106_v5  ;;  %115 = vperm.xlu1 %214, %v85_v6  }
  0x7e   :  { %v113_v15 = vpop.permute.xlu1 %112 }
  0x7f   :  { %vm117_vm1 = vcmp.eq.s32.totalorder %v110_v14, %v113_v15 }
  0x80   :  { %v119_v17 = vsel %vm117_vm1, %v82_v0, 0.0 }
  0x81   :  { %v121_v19 = vsel %vm102_vm0, %v119_v17, 0.0 }
  0x82   :  { %v116_v21 = vpop.permute.xlu1 %115 }
  0x83   :  { %vm118_vm2 = vcmp.eq.s32.totalorder %v110_v14, %v116_v21 }
  0x84   :  { %v120_v27 = vsel %vm118_vm2, %v83_v1, 0.0 }
  0x85   :  { %v124_v28 = vsel %vm102_vm0, %v120_v27, 0.0 }
  0x8c   :  { %v105_v7 = vpop.xlane.xlu0 %104 }
  0x8d   :  { %v127_v8 = vsub.f32 %v82_v0, %v105_v7 }
  0x8f   :  { %v129_v9 = vmul.f32 1.442695, %v127_v8 }
  0x90   :  { %v108_v10 = vpop.xlane.xlu0 %107 }
  0x91   :  { %216 = vpow2.f32 %v129_v9  ;;  %v128_v11 = vsub.f32 %v83_v1, %v108_v10 }
  0x93   :  { %v131_v12 = vmul.f32 1.442695, %v128_v11 }
  0x95   :  { %218 = vpow2.f32 %v131_v12 }
  0x9e   :  { %v217_v16 = vpop.eup %216 }
  0x9f   :  { %v133_v18 = vsel %vm102_vm0, %v217_v16, 0.0  ;;  %v147_v23 = vsel %vm117_vm1, %v217_v16, 0.0 }
  0xa0   :  { %134 = vadd.xlane.f32.xlu0 %v133_v18  ;;  %v149_v24 = vsel %vm102_vm0, %v147_v23, 0.0 }
  0xa2   :  { %v219_v20 = vpop.eup %218 }
  0xa3   :  { %v136_v22 = vsel %vm102_vm0, %v219_v20, 0.0  ;;  %v148_v25 = vsel %vm118_vm2, %v219_v20, 0.0 }
  0xa4   :  { %122 = vadd.xlane.f32.xlu0 %v121_v19  ;;  %137 = vadd.xlane.f32.xlu1 %v136_v22  ;;  %v152_v26 = vsel %vm102_vm0, %v148_v25, 0.0 }
  0xa8   :  { %150 = vadd.xlane.f32.xlu0 %v149_v24 }
  0xac   :  { %153 = vadd.xlane.f32.xlu0 %v152_v26 }
  0xb0   :  { %125 = vadd.xlane.f32.xlu0 %v124_v28 }
 0x129   :  { %v135_v29 = vpop.xlane.xlu0 %134 }
 0x12a   :  { %220 = vlog2.f32 %v135_v29 }
 0x12b   :  { %222 = vrcp.f32 %v135_v29 }
 0x12d   :  { %v138_v30 = vpop.xlane.xlu1 %137  ;;  %v123_v31 = vpop.xlane.xlu0 %122 }
 0x12e   :  { %224 = vlog2.f32 %v138_v30  ;;  %v139_v43 = vsub.f32 %v105_v7, %v123_v31 }
 0x12f   :  { %226 = vrcp.f32 %v138_v30 }
 0x131   :  { %v151_v32 = vpop.xlane.xlu0 %150 }
 0x135   :  { %v154_v33 = vpop.xlane.xlu0 %153 }
 0x137   :  { %v221_v34 = vpop.eup %220 }
 0x138   :  { %v223_v35 = vpop.eup %222  ;;  %v142_v38 = vmul.f32 0.6931472, %v221_v34 }
 0x139   :  { %v157_v36 = vmul.f32 %v223_v35, %v151_v32  ;;  %v126_v41 = vpop.xlane.xlu0 %125 }
 0x13a   :  { %v145_v46 = vadd.f32 %v142_v38, %v139_v43  ;;  %v140_v48 = vsub.f32 %v108_v10, %v126_v41 }
 0x13b   :  { %v225_v37 = vpop.eup %224  ;;  %v159_v39 = vsub.f32 1.0, %v157_v36 }
 0x13c   :  { %v227_v40 = vpop.eup %226  ;;  %v144_v42 = vmul.f32 0.6931472, %v225_v37 }
 0x13d   :  { %v161_v44 = vmul.f32 %v159_v39, %v159_v39  ;;  %v158_v45 = vmul.f32 %v227_v40, %v154_v33 }
 0x13e   :  { %v146_v51 = vadd.f32 %v144_v42, %v140_v48 }
 0x13f   :  { %v160_v47 = vsub.f32 1.0, %v158_v45  ;;  %v163_v49 = vmul.f32 %v161_v44, %v145_v46 }
 0x141   :  { %v162_v50 = vmul.f32 %v160_v47, %v160_v47  ;;  %v169_v53 = vsel %vm168_vm3, %v163_v49, 0.0 }
 0x143   :  { %v164_v52 = vmul.f32 %v162_v50, %v146_v51 }
 0x145   :  { %v170_v54 = vsel %vm168_vm3, %v164_v52, 0.0 }
 0x146   :  { %v171_v55 = vadd.f32 %v170_v54, %v169_v53 }
 0x148   :  { %172 = vadd.xlane.f32.xlu0 %v171_v55 }
 0x1d1   :  { %v173_v56 = vpop.xlane.xlu0 %172 }
 0x1d2   :  { %v174_v57 = vrot.slane %v173_v56, 4 }
 0x1d4   :  { %v175_v58 = vadd.f32 %v174_v57, %v173_v56 }
 0x1d6   :  { %v176_v59 = vrot.slane %v175_v58, 2 }
 0x1d8   :  { %v177_v60 = vadd.f32 %v176_v59, %v175_v58 }
 0x1da   :  { %v178_v61 = vrot.slane %v177_v60, 1 }
 0x1dc   :  { %v179_v62 = vadd.f32 %v178_v61, %v177_v60 }
 0x1de   :  { %209 = vpush %v179_v62 }
 0x20f   :  { %s210_s0 = spop %209 }
 0x210   :  { %183 = sst [smem:[#allocation2]] %s210_s0 }
 0x211   :  { %191 = dma.smem_to_hbm %s239_s1, 16, %s280_s2, [#allocation3]  }
 0x212   :  { %236 = dma.done.wait [#allocation3], 16  }
 0x213   :  { %237 = vsyncadd [#allocation3], 4294967280 }
 0x214   :  { %195 = sfence }
 0x215   :  { %196 = vsyncpa [#allocation3], 1 }

</bundles_post_ra>
